<compile_context>
chip_gen: v5e
topology: v5e:2x2
jax: 0.10.0
libtpu: 0.0.40
codegen_flags: <defaults>
</compile_context>

<pallas_src>
import functools

import jax
import jax.numpy as jnp
from jax.experimental import pallas as pl
from jax.experimental.pallas import tpu as pltpu


def _distill_kl_kernel(ys_ref, yt_ref, out_ref, *, inv_T, inv_tem, n_rows,
                       tile_rows, mask_tail):
    """Per-block partial of sum(p_t * (log(p_t) - log_softmax(y_s)/tem))."""
    i = pl.program_id(0)

    ys = ys_ref[...]                                   # native dtype (TB, C)
    yt = yt_ref[...]

    # Row maxima in the native dtype (max is exact in bf16); the f32 upcast is
    # folded into the subtract/exp chain so no standalone f32 input copies
    # stay live across the whole body.
    ys_max = jnp.max(ys, axis=1, keepdims=True)
    yt_max = jnp.max(yt, axis=1, keepdims=True)
    ys_shift = ys.astype(jnp.float32) - ys_max.astype(jnp.float32)          # (TB,C)
    yt_shift = (yt.astype(jnp.float32) - yt_max.astype(jnp.float32)) * inv_T

    e_s = jnp.exp(ys_shift)                            # student softmax numer
    e_t = jnp.exp(yt_shift)                            # teacher softmax numer

    # axis=1 reductions on the (otherwise idle) MXU via a ones vector; keeps
    # only the row maxima on the XLU.
    ones = jnp.ones((e_s.shape[1], 1), jnp.float32)
    z_s = jnp.dot(e_s, ones, preferred_element_type=jnp.float32)            # (TB,1)
    denom = jnp.dot(e_t, ones, preferred_element_type=jnp.float32)          # (TB,1)
    # Fused weighted sum: sum_c e_t * (yt_shift - ys_shift / tem)
    ws = jnp.dot(e_t * (yt_shift - inv_tem * ys_shift), ones,
                 preferred_element_type=jnp.float32)                        # (TB,1)

    # Per-row KL:  ws/denom - log(denom) + log(z_s)/tem
    # (uses sum_c p_t = 1 to pull the row-constant log terms out of the sum).
    row_kl = (ws * pl.reciprocal(denom, approx=True)
              - jnp.log(denom) + inv_tem * jnp.log(z_s))                    # (TB,1)

    if mask_tail:  # static: only compiled in when the batch was zero-padded
        row = jax.lax.broadcasted_iota(jnp.int32, (tile_rows, 1), 0)
        row_kl = jnp.where(i * tile_rows + row < n_rows, row_kl, 0.0)

    # Broadcast the scalar partial over a lane/sublane-aligned (1, 8, 128)
    # tile; the wrapper reads [:, 0, 0].
    out_ref[...] = jnp.zeros(out_ref.shape, jnp.float32) + jnp.sum(row_kl)


def distill_kl(y_s, y_t, T, epoch, *, block_rows=None):
    """Pallas implementation of DistillKL(T).forward(y_s, y_t, epoch)."""
    assert y_s.shape == y_t.shape and y_s.ndim == 2
    B, C = y_s.shape
    T = float(T)
    tem = 8.0 * (0.99 ** epoch)

    elt = jnp.dtype(y_s.dtype).itemsize
    # Sublane packing of the input dtype: 8 for f32, 16 for bf16, 32 for 8-bit.
    sublane = max(8, 32 // max(elt, 1))

    # VMEM bytes per batch row: 2 inputs x 2 pipeline buffers (input dtype)
    # plus ~6 live f32 (TB, C) intermediates inside the kernel body.
    bytes_per_row = C * (4 * elt + 6 * 4)

    if block_rows is None:
        budget = 16 * 1024 * 1024          # data budget, fits all generations
        tb = max(sublane, (budget // bytes_per_row) // sublane * sublane)
        tb = min(tb, 1024)
        # Keep >= 4 grid steps where possible so the "parallel" axis feeds
        # both v7x TensorCores and the pipeline has iterations to overlap.
        quarter = -(-B // 4)
        quarter = max(sublane, -(-quarter // sublane) * sublane)
        tb = min(tb, quarter)
    else:
        tb = max(sublane, ((int(block_rows) + sublane - 1) // sublane) * sublane)

    b_pad = -(-B // tb) * tb
    if b_pad != B:
        pad = b_pad - B
        y_s = jnp.pad(y_s, ((0, pad), (0, 0)))
        y_t = jnp.pad(y_t, ((0, pad), (0, 0)))
    num_blocks = b_pad // tb

    # Explicit scoped-VMEM limit: covers pipeline buffers + intermediates with
    # headroom; >= 32 MiB (above v5e's 16 MiB default), capped at 64 MiB.
    data_bytes = tb * bytes_per_row
    vmem_limit = int(min(64 << 20, max(32 << 20, data_bytes * 5 // 4 + (2 << 20))))

    # TODO(synk): n_rows/tile_rows are compile-time constants, so each new
    # batch size recompiles the pallas_call (could be moved to scalar prefetch).
    kernel = functools.partial(
        _distill_kl_kernel,
        inv_T=1.0 / T,
        inv_tem=1.0 / float(tem),
        n_rows=B,
        tile_rows=tb,
        mask_tail=(b_pad != B),
    )

    partials = pl.pallas_call(
        kernel,
        out_shape=jax.ShapeDtypeStruct((num_blocks, 8, 128), jnp.float32),
        grid=(num_blocks,),
        in_specs=[
            pl.BlockSpec((tb, C), lambda i: (i, 0)),
            pl.BlockSpec((tb, C), lambda i: (i, 0)),
        ],
        out_specs=pl.BlockSpec((1, 8, 128), lambda i: (i, 0, 0)),
        compiler_params=pltpu.CompilerParams(
            dimension_semantics=("parallel",),
            vmem_limit_bytes=vmem_limit,
        ),
        cost_estimate=pl.CostEstimate(
            flops=10 * b_pad * C,
            transcendentals=2 * b_pad * C,
            bytes_accessed=2 * b_pad * C * elt + num_blocks * 8 * 128 * 4,
        ),
    )(y_s, y_t)

    # Tiny final reduction over per-block partials in plain XLA.
    return jnp.sum(partials[:, 0, 0]) * (T * T / B)


def _reference(y_s, y_t, T, epoch):
    """Pure-JAX reference matching the PyTorch semantics."""
    tem = 8.0 * (0.99 ** epoch)
    y_s = y_s.astype(jnp.float32)
    y_t = y_t.astype(jnp.float32)
    p_s = jax.nn.log_softmax(y_s, axis=1) / tem
    p_t = jax.nn.softmax(y_t / T, axis=1)
    kl = jnp.sum(p_t * (jnp.log(p_t) - p_s))
    return kl * (T ** 2) / y_s.shape[0]


if __name__ == "__main__":
    key = jax.random.PRNGKey(0)
    k1, k2 = jax.random.split(key)

    B, C = 20, 32         # small (batch, num_classes) logits
    T = 4.0               # distillation temperature (module __init__ arg)
    epoch = 3             # forward() arg

    y_s = jax.random.normal(k1, (B, C), dtype=jnp.float32)
    y_t = jax.random.normal(k2, (B, C), dtype=jnp.float32)

    # 1) Multi-block path: block_rows=8 -> 3 grid steps, padded batch, masked tail.
    loss_tiled = jax.block_until_ready(distill_kl(y_s, y_t, T, epoch, block_rows=8))
    # 2) Default path: auto tile sizing (>= 2 blocks for this batch).
    loss_auto = jax.block_until_ready(distill_kl(y_s, y_t, T, epoch))

    ref = _reference(y_s, y_t, T, epoch)
    # Tolerance is slightly wider than f32 exact because 1/denom uses the EUP
    # approximate reciprocal (per perf review); still far tighter than bf16.
    assert jnp.allclose(loss_tiled, ref, rtol=3e-4, atol=1e-5), (loss_tiled, ref)
    assert jnp.allclose(loss_auto, ref, rtol=3e-4, atol=1e-5), (loss_auto, ref)

    # 3) bf16 logits in HBM (recommended default input path on bandwidth-bound
    #    v5e/v6e -> halves kernel input bytes); compute stays f32 in VMEM.
    ys_bf, yt_bf = y_s.astype(jnp.bfloat16), y_t.astype(jnp.bfloat16)
    loss_bf16 = jax.block_until_ready(distill_kl(ys_bf, yt_bf, T, epoch, block_rows=8))
    ref_bf16 = _reference(ys_bf, yt_bf, T, epoch)
    assert jnp.allclose(loss_bf16, ref_bf16, rtol=3e-4, atol=1e-5), (loss_bf16, ref_bf16)

    print("KERNEL_OK")
</pallas_src>

<mosaic_0001>
module attributes {stable_mosaic.version = 11 : i64} {
  func.func @_distill_kl_kernel(%arg0: i32, %arg1: memref<8x32xf32, #tpu.memory_space<vmem>>, %arg2: memref<8x32xf32, #tpu.memory_space<vmem>>, %arg3: memref<1x8x128xf32, #tpu.memory_space<vmem>>) attributes {dimension_semantics = [#tpu.dimension_semantics<parallel>], iteration_bounds = array<i64: 3>, scalar_prefetch = 0 : i64, scratch_operands = 0 : i64, tpu.core_type = #tpu.core_type<tc>, window_params = [{transform_indices = @transform_0, window_bounds = array<i64: 8, 32>}, {transform_indices = @transform_1, window_bounds = array<i64: 8, 32>}, {transform_indices = @transform_2, window_bounds = array<i64: 1, 8, 128>}]} {
    %c0 = arith.constant 0 : index
    %c0_0 = arith.constant 0 : index
    %0 = vector.load %arg1[%c0, %c0_0] : memref<8x32xf32, #tpu.memory_space<vmem>>, vector<8x32xf32>
    %c0_1 = arith.constant 0 : index
    %c0_2 = arith.constant 0 : index
    %1 = vector.load %arg2[%c0_1, %c0_2] : memref<8x32xf32, #tpu.memory_space<vmem>>, vector<8x32xf32>
    %cst = arith.constant dense<0xFF800000> : vector<8xf32>
    %2 = vector.multi_reduction <maximumf>, %0, %cst [1] : vector<8x32xf32> to vector<8xf32>
    %3 = vector.shape_cast %2 : vector<8xf32> to vector<8x1xf32>
    %cst_3 = arith.constant dense<0xFF800000> : vector<8xf32>
    %4 = vector.multi_reduction <maximumf>, %1, %cst_3 [1] : vector<8x32xf32> to vector<8xf32>
    %5 = vector.shape_cast %4 : vector<8xf32> to vector<8x1xf32>
    %6 = vector.broadcast %3 : vector<8x1xf32> to vector<8x32xf32>
    %7 = arith.subf %0, %6 : vector<8x32xf32>
    %8 = vector.broadcast %5 : vector<8x1xf32> to vector<8x32xf32>
    %9 = arith.subf %1, %8 : vector<8x32xf32>
    %cst_4 = arith.constant 2.500000e-01 : f32
    %10 = vector.broadcast %cst_4 : f32 to vector<8x32xf32>
    %11 = arith.mulf %9, %10 : vector<8x32xf32>
    %12 = math.exp %7 : vector<8x32xf32>
    %13 = math.exp %11 : vector<8x32xf32>
    %cst_5 = arith.constant 1.000000e+00 : f32
    %14 = vector.broadcast %cst_5 : f32 to vector<32x1xf32>
    %cst_6 = arith.constant dense<0.000000e+00> : vector<8x1xf32>
    %15 = tpu.matmul %12, %14, %cst_6 {dimension_numbers = #tpu.dot_dimension_numbers<[1], [0], [0], [1], [0, 0, 1, 1], [], []>} : vector<8x32xf32>, vector<32x1xf32>, vector<8x1xf32> -> vector<8x1xf32>
    %cst_7 = arith.constant dense<0.000000e+00> : vector<8x1xf32>
    %16 = tpu.matmul %13, %14, %cst_7 {dimension_numbers = #tpu.dot_dimension_numbers<[1], [0], [0], [1], [0, 0, 1, 1], [], []>} : vector<8x32xf32>, vector<32x1xf32>, vector<8x1xf32> -> vector<8x1xf32>
    %cst_8 = arith.constant 0.128826275 : f32
    %17 = vector.broadcast %cst_8 : f32 to vector<8x32xf32>
    %18 = arith.mulf %17, %7 : vector<8x32xf32>
    %19 = arith.subf %11, %18 : vector<8x32xf32>
    %20 = arith.mulf %13, %19 : vector<8x32xf32>
    %cst_9 = arith.constant dense<0.000000e+00> : vector<8x1xf32>
    %21 = tpu.matmul %20, %14, %cst_9 {dimension_numbers = #tpu.dot_dimension_numbers<[1], [0], [0], [1], [0, 0, 1, 1], [], []>} : vector<8x32xf32>, vector<32x1xf32>, vector<8x1xf32> -> vector<8x1xf32>
    %22 = tpu.reciprocal %16 {approx = true} : vector<8x1xf32> -> vector<8x1xf32>
    %23 = arith.mulf %21, %22 : vector<8x1xf32>
    %24 = math.log %16 : vector<8x1xf32>
    %25 = arith.subf %23, %24 : vector<8x1xf32>
    %26 = math.log %15 : vector<8x1xf32>
    %cst_10 = arith.constant 0.128826275 : f32
    %27 = vector.broadcast %cst_10 : f32 to vector<8x1xf32>
    %28 = arith.mulf %27, %26 : vector<8x1xf32>
    %29 = arith.addf %25, %28 : vector<8x1xf32>
    %30 = tpu.iota {dimensions = array<i32: 0>} : vector<8x1xi32>
    %c8_i32 = arith.constant 8 : i32
    %31 = arith.muli %arg0, %c8_i32 : i32
    %32 = vector.broadcast %31 : i32 to vector<8x1xi32>
    %33 = arith.addi %32, %30 : vector<8x1xi32>
    %c20_i32 = arith.constant 20 : i32
    %34 = vector.broadcast %c20_i32 : i32 to vector<8x1xi32>
    %35 = arith.cmpi slt, %33, %34 : vector<8x1xi32>
    %cst_11 = arith.constant 0.000000e+00 : f32
    %36 = vector.broadcast %cst_11 : f32 to vector<8x1xf32>
    %37 = arith.select %35, %29, %36 : vector<8x1xi1>, vector<8x1xf32>
    %cst_12 = arith.constant 0.000000e+00 : f32
    %38 = vector.broadcast %cst_12 : f32 to vector<1x8x128xf32>
    %39 = vector.shape_cast %37 : vector<8x1xf32> to vector<1x8x1xf32>
    %cst_13 = arith.constant dense<0.000000e+00> : vector<1xf32>
    %40 = vector.multi_reduction <add>, %39, %cst_13 [1, 2] : vector<1x8x1xf32> to vector<1xf32>
    %41 = vector.shape_cast %40 : vector<1xf32> to vector<1x1x1xf32>
    %42 = vector.extract %41[0, 0, 0] : f32 from vector<1x1x1xf32>
    %43 = vector.broadcast %42 : f32 to vector<1x8x128xf32>
    %44 = arith.addf %38, %43 : vector<1x8x128xf32>
    %c0_14 = arith.constant 0 : index
    %c0_15 = arith.constant 0 : index
    %c0_16 = arith.constant 0 : index
    %45 = vector.load %arg3[%c0_14, %c0_15, %c0_16] : memref<1x8x128xf32, #tpu.memory_space<vmem>>, vector<1x8x128xf32>
    tpu.vector_store %arg3[%c0_14, %c0_15, %c0_16], %44 {strides = array<i32>} : memref<1x8x128xf32, #tpu.memory_space<vmem>>, vector<1x8x128xf32>,
    return
  }
  func.func @transform_0(%arg0: i32) -> (i32, i32) {
    %c0_i32 = arith.constant 0 : i32
    %c0_i32_0 = arith.constant 0 : i32
    return %arg0, %c0_i32 : i32, i32
  }
  func.func @transform_1(%arg0: i32) -> (i32, i32) {
    %c0_i32 = arith.constant 0 : i32
    %c0_i32_0 = arith.constant 0 : i32
    return %arg0, %c0_i32 : i32, i32
  }
  func.func @transform_2(%arg0: i32) -> (i32, i32, i32) {
    %c0_i32 = arith.constant 0 : i32
    %c0_i32_0 = arith.constant 0 : i32
    %c0_i32_1 = arith.constant 0 : i32
    return %arg0, %c0_i32, %c0_i32_0 : i32, i32, i32
  }
}

</mosaic_0001>

<bundles_post_ra>
// kernel: tpu_custom_call.1
= control target key start
LH: loop header
LB: loop body
LE: loop exit
PB: predicated region body
PF: predicated region fallthrough
CT: control target
= control target key end

     0   :  { %7 = vsyncpa [#allocation3], 0  ;;  %s826_s0 = inlined_call_operand.hbm [shape: f32[24,32], index: 0, kind: input, shape index: {}]   ;;  %s827_s1 = inlined_call_operand.hbm [shape: f32[24,32], index: 1, kind: input, shape index: {}]   ;;  %s828_s2 = inlined_call_operand.hbm [shape: f32[3,8,128], index: 2, kind: output, shape index: {}]  }
   0x1   :  { %9 = vsyncpa [#allocation3 + $0x1], 0 }
   0x2   :  { %10 = vsyncpa [#allocation6], 0 }
   0x3   :  { %12 = vsyncpa [#allocation6 + $0x1], 0 }
   0x4   :  { %13 = vsyncpa [#allocation4], 0 }
   0x5   :  { %15 = vsyncpa [#allocation4 + $0x1], 0  ;;  %s658_s9 = smov 0   ;;  %s660_s10 = smov 0  }
   0x6   :  { %s662_s11 = smov 0   ;;  %s664_s12 = smov 0  }
   0x7 LB: > { %s679_s13 = sadd.s32 4294967295, %s640_s12   ;;  %s427_s14 = sadd.s32 4294967294, %s640_s12   ;;  %s640_s12 = sphi %s664_s12, %s838_s12   ;;  %s636_s11 = sphi %s662_s11, %s837_s11   ;;  %s632_s10 = sphi %s660_s10, %s836_s10   ;;  %s628_s9 = sphi %s658_s9, %s835_s9  }
   0x8   : > { %s683_s15 = sadd.s32 1, %s640_s12   ;;  %s28_s16 = sadd.s32 1, %s636_s11 }
   0x9   : > { %s25_s17 = ssub.s32 %s640_s12, %s683_s15  ;;  %p35_p0 = scmp.ne.s32.totalorder %s636_s11, %s632_s10 }
   0xa   : > { %p26_p1 = scmp.eq.s32.totalorder %s25_s17, 0  ;;  %p36_p2 = scmp.eq.s32.totalorder %s640_s12, 0 }
   0xb   : > { %p41_p3 = scmp.ne.s32.totalorder %s632_s10, %s628_s9  ;;  %p42_p4 = scmp.eq.s32.totalorder %s679_s13, 0 }
   0xc   : > { %s695_s18 = scalar_select %p26_p1, %s636_s11, %s28_s16  }
   0xd   : > { %p697_p5 = por %p36_p2, %p35_p0  ;;  %p701_p6 = por %p42_p4, %p41_p3 }
   0xe   : > { %p91_p7 = scmp.eq.s32.totalorder %s679_s13, 2  ;;  %p97_p8 = scmp.eq.s32.totalorder %s427_s14, 2 }
   0xf   : > { %p465_p9 = scmp.lt.s32.totalorder %s640_s12, 3  ;;  %s716_s23 = sand.u32 1, %s636_s11  }
  0x10   : > { %p707_p10 = por %p91_p7, %p35_p0  ;;  %p711_p11 = por %p97_p8, %p41_p3 }
  0x11   : > { %s431_s24 = sshll.u32 %s640_s12, 3  ;;  %s430_s25 = sshll.u32 %s716_s23, 3 }
  0x12   : > { %s125_s28 = scalar_lea.hbm %s826_s0, %s431_s24  ;;  %s121_s30 = scalar_lea.vmem [#allocation2], %s430_s25 }
  0x13   : > { %s127_s29 = sshll.u32 %s125_s28, 4  ;;  %s129_s3 = sshll.u32 %s121_s30, 4  ;;  %s128_s29 = int_to_ptr.hbm [resolvable:$true] %s127_s29  ;;  %s130_s3 = int_to_ptr.vmem [resolvable:$true] %s129_s3 }
  0x14   : > { %p725_p12 = pnand %p465_p9, %p697_p5  ;;  %p434_p13 = scmp.ge.s32.totalorder %s640_s12, 1 }
  0x15   : > { %p153_p0 = scmp.lt.s32.totalorder %s640_s12, 4  ;;  %s118_s5 = scalar_lea.sflag [#allocation3], %s716_s23 }
  0x16   : > { %s510_s6 = sshra.s32 %s128_s29, 4  ;;  %p514_p2 = pneg %p725_p12  ;;  %s511_s6 = int_to_ptr.hbm [resolvable:$true] %s510_s6 }
  0x17   : > { %s512_s7 = scalar_lea.hbm %s511_s6, 8  ;;  %s517_s16 = scalar_lea.hbm %s826_s0, 24 }
  0x18   : > { %p513_p1 = scmp.ne.s32.totalorder %s511_s6, %s512_s7  ;;  %p518_p5 = scmp.lt.s32.totalorder %s511_s6, %s826_s0 }
  0x19   : > { %p519_p7 = scmp.lt.s32.totalorder %s517_s16, %s512_s7 }
  0x1a   : > { %p515_p3 = pnand %p514_p2, %p513_p1 }
  0x1b   : > { %p520_p8 = por %p519_p7, %p518_p5 }
  0x1c   : > { %p516_p4 = pneg %p515_p3 }
  0x1e   : > { %p521_p9 = pnand %p520_p8, %p516_p4 }
  0x20   : > { %524 = shalt.err (!%p521_p9)
}
  0x21   : > { %457 = dma.hbm_to_vmem [thread:$0]  (!%p725_p12), %s128_s29, 128, %s130_s3, %s118_s5  }
  0x22   : > { %p749_p1 = pnand %p434_p13, %p153_p0  ;;  %s144_s30 = scalar_lea.hbm %s827_s1, %s431_s24 }
  0x23   : > { %s146_s6 = sshll.u32 %s144_s30, 4  ;;  %s140_s7 = scalar_lea.vmem [#allocation5], %s430_s25  ;;  %s147_s6 = int_to_ptr.hbm [resolvable:$true] %s146_s6 }
  0x24   : > { %s148_s8 = sshll.u32 %s140_s7, 4  ;;  %s137_s14 = scalar_lea.sflag [#allocation6], %s716_s23  ;;  %s149_s8 = int_to_ptr.vmem [resolvable:$true] %s148_s8 }
  0x25   : > { %s540_s16 = sshra.s32 %s147_s6, 4  ;;  %s547_s5 = scalar_lea.hbm %s827_s1, 24  ;;  %s541_s16 = int_to_ptr.hbm [resolvable:$true] %s540_s16 }
  0x26   : > { %s542_s17 = scalar_lea.hbm %s541_s16, 8  ;;  %p548_p4 = scmp.lt.s32.totalorder %s541_s16, %s827_s1 }
  0x27   : > { %p543_p3 = scmp.ne.s32.totalorder %s541_s16, %s542_s17  ;;  %p549_p5 = scmp.lt.s32.totalorder %s547_s5, %s542_s17 }
  0x29   : > { %p545_p13 = pnand %p543_p3, %p514_p2  ;;  %p550_p7 = por %p549_p5, %p548_p4 }
  0x2b   : > { %p546_p0 = pneg %p545_p13 }
  0x2d   : > { %p551_p8 = pnand %p550_p7, %p546_p0 }
  0x2f   : > { %554 = shalt.err (!%p551_p8)
}
  0x30   : > { %460 = dma.hbm_to_vmem [thread:$0]  (!%p725_p12), %s147_s6, 128, %s149_s8, %s137_s14  }
  0x31   : > { %157 = sbr.rel (%p749_p1) target bundleno = 517 (0x205), region = 28  ;;  %s771_s23 = sand.u32 (!%p749_p1), 1, %s632_s10  }
  0x32   : > { %s774_s25 = sshll.u32 (!%p749_p1), %s771_s23, 3  ;;  %s160_s27 = scalar_lea.sflag (!%p749_p1), [#allocation3], %s771_s23 }
  0x33   : > { %s163_s28 = scalar_lea.vmem (!%p749_p1), [#allocation2], %s774_s25 }
  0x36   : > { %615 = dma.done.wait (%p701_p6), %s160_s27, 128  }
  0x37   : > { %617 = vsyncadd (%p701_p6), %s160_s27, 4294967168  ;;  %s170_s4 = scalar_lea.sflag [#allocation6], %s771_s23  ;;  %s173_s26 = scalar_lea.vmem [#allocation5], %s774_s25 }
  0x38   : > { %619 = dma.done.wait (%p701_p6), %s170_s4, 128  }
  0x39   : > { %621 = vsyncadd (%p701_p6), %s170_s4, 4294967168  ;;  %vm202_vm0 = vcmask 261120   ;;  %v201_v0 = vld [vmem:[%s173_s26] sm:$0xff]  ;;  %v200_v2 = vld [vmem:[%s163_s28] sm:$0xff]  ;;  %v642_v4 = vmov 1.0   ;;  %v297_v18 = vlaneseq  ;;  %s441_s20 = sshll.u32 %s679_s13, 3 }
  0x3a   : > { %v206_v1 = vsel %vm202_vm0, %v201_v0, -inf  ;;  %v203_v3 = vsel %vm202_vm0, %v200_v2, -inf  ;;  %254 = vmatpush.msra.mxu1 %v642_v4  ;;  %280 = vmatpush.msra.mxu2 %v642_v4  ;;  %v300_v23 = vstv %s441_s20  ;;  %vm304_vm2 = vcmask 7168   ;;  %s329_s6 = scalar_lea.hbm %s828_s2, %s441_s20  ;;  %s199_s7 = scalar_lea.vmem [#allocation7], %s774_s25 }
  0x3b   : > { %207 = vmax.xlane.f32.xlu0 %v206_v1  ;;  %231 = vmatpush.msra.mxu0 %v642_v4  ;;  %v298_v21 = vshrl.u32 %v297_v18, 7  ;;  %s331_s8 = sshll.u32 %s199_s7, 4  ;;  %s333_s14 = sshll.u32 %s329_s6, 4  ;;  %s332_s8 = int_to_ptr.vmem [resolvable:$true] %s331_s8  ;;  %s334_s14 = int_to_ptr.hbm [resolvable:$true] %s333_s14 }
  0x3c   : > { %255 = vmatpush.msra.mxu1 %v642_v4  ;;  %281 = vmatpush.msra.mxu2 %v642_v4  ;;  %s319_s17 = scalar_lea.sflag [#allocation4], %s771_s23  ;;  %s584_s29 = sshra.s32 %s334_s14, 4  ;;  %s585_s29 = int_to_ptr.hbm [resolvable:$true] %s584_s29 }
  0x3d   : > { %232 = vmatpush.msra.mxu0 %v642_v4  ;;  %v301_v27 = vadd.s32 %v300_v23, %v298_v21  ;;  %s586_s3 = scalar_lea.hbm %s585_s29, 8  ;;  %s590_s24 = scalar_lea.hbm %s828_s2, 24 }
  0x3e   : > { %256 = vmatpush.msra.mxu1 %v642_v4  ;;  %282 = vmatpush.msra.mxu2 %v642_v4  ;;  %p587_p6 = scmp.ne.s32.totalorder %s585_s29, %s586_s3  ;;  %p591_p9 = scmp.lt.s32.totalorder %s585_s29, %s828_s2 }
  0x3f   : > { %233 = vmatpush.msra.mxu0 %v642_v4  ;;  %vm302_vm1 = vcmp.lt.s32.totalorder %v301_v27, 20  ;;  %p592_p1 = scmp.lt.s32.totalorder %s590_s24, %s586_s3 }
  0x40   : > { %257 = vmatpush.msra.mxu1 %v642_v4  ;;  %283 = vmatpush.msra.mxu2 %v642_v4  ;;  %p588_p12 = pnand %p587_p6, %p707_p10 }
  0x41   : > { %234 = vmatpush.msra.mxu0 %v642_v4  ;;  %p593_p3 = por %p592_p1, %p591_p9 }
  0x42   : > { %p589_p2 = pneg %p588_p12 }
  0x43   : > { %204 = vmax.xlane.f32.xlu0 %v203_v3 }
  0x44   : > { %p594_p13 = pnand %p593_p3, %p589_p2 }
  0xae   : > { %v208_v5 = vpop.xlane.xlu0 %207 }
  0xaf   : > { %v210_v6 = vsub.f32 %v201_v0, %v208_v5 }
  0xb1   : > { %v211_v7 = vmul.f32 0.25, %v210_v6 }
  0xb3   : > { %v214_v8 = vmul.f32 1.442695, %v211_v7 }
  0xb5   : > { %500 = vpow2.f32 %v214_v8 }
  0xb6   : > { %v205_v9 = vpop.xlane.xlu0 %204 }
  0xb7   : > { %v209_v10 = vsub.f32 %v200_v2, %v205_v9 }
  0xb9   : > { %v212_v11 = vmul.f32 1.442695, %v209_v10  ;;  %v262_v12 = vmul.f32 0.12882628, %v209_v10 }
  0xbb   : > { %v501_v13 = vpop.eup %500  ;;  %502 = vpow2.f32 %v212_v11  ;;  %v263_v14 = vsub.f32 %v211_v7, %v262_v12 }
  0xbc   : > { %439 = vmatmul.msk.f32.vlgmr.msra.gmra.mxu1 %vm202_vm0, %v501_v13 }
  0xbd   : > { %v264_v15 = vmul.f32 %v501_v13, %v263_v14 }
  0xbf   : > { %440 = vmatmul.msk.f32.vlgmr.msra.gmra.mxu2 %vm202_vm0, %v264_v15 }
  0xc1   : > { %v503_v16 = vpop.eup %502 }
  0xc2   : > { %438 = vmatmul.msk.f32.vlgmr.msra.gmra.mxu0 %vm202_vm0, %v503_v16 }
 0x139   : > { %v259_v17 = vpop.f32.mrf.mxu1 }
 0x13a   : > { %504 = vrcp.f32 %v259_v17 }
 0x13b   : > { %506 = vlog2.f32 %v259_v17 }
 0x13f   : > { %v236_v19 = vpop.f32.mrf.mxu0 }
 0x140   : > { %508 = vlog2.f32 %v236_v19  ;;  %v505_v22 = vpop.eup %504 }
 0x141   : > { %v507_v24 = vpop.eup %506 }
 0x142   : > { %v285_v20 = vpop.f32.mrf.mxu2  ;;  %v291_v28 = vmul.f32 0.6931472, %v507_v24 }
 0x143   : > { %v289_v25 = vmul.f32 %v505_v22, %v285_v20 }
 0x145   : > { %v292_v31 = vsub.f32 %v289_v25, %v291_v28 }
 0x146   : > { %v509_v26 = vpop.eup %508 }
 0x147   : > { %v294_v29 = vmul.f32 0.6931472, %v509_v26 }
 0x149   : > { %v295_v30 = vmul.f32 0.12882628, %v294_v29 }
 0x14b   : > { %v296_v32 = vadd.f32 %v295_v30, %v292_v31 }
 0x14d   : > { %v303_v33 = vsel %vm302_vm1, %v296_v32, 0.0 }
 0x14e   : > { %v305_v34 = vsel %vm304_vm2, %v303_v33, 0.0 }
 0x14f   : > { %306 = vadd.xlane.f32.xlu1 %v305_v34 }
 0x1c2   : > { %v307_v35 = vpop.xlane.xlu1 %306 }
 0x1c3   : > { %v308_v36 = vrot.slane %v307_v35, 4 }
 0x1c5   : > { %v309_v37 = vadd.f32 %v308_v36, %v307_v35 }
 0x1c7   : > { %v310_v38 = vrot.slane %v309_v37, 2 }
 0x1c9   : > { %v311_v39 = vadd.f32 %v310_v38, %v309_v37 }
 0x1cb   : > { %v312_v40 = vrot.slane %v311_v39, 1 }
 0x1cd   : > { %v313_v41 = vadd.f32 %v312_v40, %v311_v39 }
 0x1cf   : > { %446 = vpush %v313_v41 }
 0x200   : > { %s447_s16 = spop %446 }
 0x201   : > { %v315_v42 = vstv %s447_s16 }
 0x202   : > { %317 = vst [vmem:[%s199_s7] sm:$0xff] %v315_v42 }
 0x203   : > { %597 = shalt.err (!%p594_p13)
}
 0x204   : > { %452 = dma.vmem_to_hbm [thread:$0]  (%p707_p10), %s332_s8, 128, %s334_s14, %s319_s17  }
 0x205 PF: > { %p466_p0 = scmp.ge.s32.totalorder %s640_s12, 2  ;;  %s345_s23 = sand.u32 1, %s628_s9  }
 0x206   : > { %s346_s28 = scalar_lea.sflag [#allocation4], %s345_s23 }
 0x207   : > { %p462_p4 = pnand %p466_p0, %p711_p11 }
 0x209   : > { %p463_p5 = pneg %p462_p4 }
 0x20b   : > { %623 = dma.done.wait (%p463_p5), %s346_s28, 128  }
 0x20c   : > { %625 = vsyncadd (%p463_p5), %s346_s28, 4294967168  ;;  %p18_p7 = scmp.ge.s32.totalorder %s683_s15, 5   ;;  %s835_s9 = smov %s632_s10 }
 0x20d   : > { %s836_s10 = smov %s636_s11  ;;  %s837_s11 = smov %s695_s18 }
 0x20e   : > { %s838_s12 = smov %s683_s15  ;;  %20 = sbr.rel (!%p18_p7) target bundleno = 7 (0x7), region = 86 }
 0x213   :  { %352 = vsyncpa [#allocation3], 1 }
 0x214   :  { %354 = vsyncpa [#allocation3 + $0x1], 1 }
 0x215   :  { %355 = vsyncpa [#allocation6], 1 }
 0x216   :  { %357 = vsyncpa [#allocation6 + $0x1], 1 }
 0x217   :  { %358 = vsyncpa [#allocation4], 1 }
 0x218   :  { %360 = vsyncpa [#allocation4 + $0x1], 1 }

</bundles_post_ra>
